<compile_context>
chip_gen: v6e
topology: v6e:2x2x1
jax: 0.10.0
libtpu: 0.0.40
codegen_flags: <defaults>
</compile_context>

<pallas_src>
import functools

import jax
import jax.numpy as jnp
from jax.experimental import pallas as pl
from jax.experimental.pallas import tpu as pltpu

IN_DIM = 74    # fc1 input
H1_DIM = 50    # fc1 output
HD_DIM = 10    # fc1_var output
H2_DIM = 60    # fc2 width
OUT_DIM = 100  # fc_final output


def _cdiv(a, b):
    return -(-a // b)


def _round_up(n, m):
    return ((n + m - 1) // m) * m


def domain_enc_kernel(x_ref, d_ref,
                      w1_ref, b1_ref,
                      w1v_ref, b1v_ref,
                      w2x_ref, w2d_ref, b2_ref,
                      wf_ref, bf_ref,
                      out_ref):
    mm_dt = w1_ref.dtype          # matmul operand dtype (f32 or bf16)
    x = x_ref[...]                # [Bt, 74] f32
    d = d_ref[...]                # [Bt, 1]  f32

    # x_domain = relu(fc1_var(domain)) -- fc1_var: 1 -> 10.
    # K=1 matmul is a broadcasted outer product on the VPU (kept f32 on all chips).
    hd = jnp.maximum(d * w1v_ref[...] + b1v_ref[...], 0.0)          # [Bt, 10]
    # drop1_var: identity (eval mode)

    # h1 = relu(fc1(x)) -- fc1: 74 -> 50
    h1 = jnp.dot(x.astype(mm_dt), w1_ref[...],
                 preferred_element_type=jnp.float32)
    h1 = jnp.maximum(h1 + b1_ref[...], 0.0)                         # [Bt, 50]
    # drop1: identity (eval mode)

    # h2 = relu(fc2(cat([h1, hd], dim=1))) -- fc2: 60 -> 60.
    # concat folded into a split matmul: cat(h1,hd) @ W2 == h1 @ W2[:50] + hd @ W2[50:]
    h2 = (jnp.dot(h1.astype(mm_dt), w2x_ref[...],
                  preferred_element_type=jnp.float32)
          + jnp.dot(hd.astype(mm_dt), w2d_ref[...],
                    preferred_element_type=jnp.float32)
          + b2_ref[...])
    h2 = jnp.maximum(h2, 0.0)                                       # [Bt, 60]

    # out = relu(fc_final(h2)) -- fc_final: 60 -> 100, stored directly (no lane pad).
    out = jnp.dot(h2.astype(mm_dt), wf_ref[...],
                  preferred_element_type=jnp.float32)
    out_ref[...] = jnp.maximum(out + bf_ref[...], 0.0).astype(out_ref.dtype)


def prepare_params(p, matmul_dtype=jnp.float32):
    """One-time preprocessing of PyTorch-style [out, in] params for the kernel.

    Transposes weights to [in, out], splits fc2 so torch.cat becomes a split matmul,
    and optionally casts the MXU weights to bf16 (accumulation stays f32). Biases and
    the tiny fc1_var stay f32 (VPU path; v5e has no bf16 VPU).
    """
    w2_t = p["w2"].T                                      # [60, 60]
    return dict(
        w1=p["w1"].T.astype(matmul_dtype),                # [74, 50]
        b1=p["b1"].reshape(1, -1),                        # [1, 50]
        w1v=p["w1v"].T,                                   # [1, 10]
        b1v=p["b1v"].reshape(1, -1),                      # [1, 10]
        w2x=w2_t[:H1_DIM, :].astype(matmul_dtype),        # [50, 60]
        w2d=w2_t[H1_DIM:, :].astype(matmul_dtype),        # [10, 60]
        b2=p["b2"].reshape(1, -1),                        # [1, 60]
        wf=p["wf"].T.astype(matmul_dtype),                # [60, 100]
        bf=p["bf"].reshape(1, -1),                        # [1, 100]
    )


@functools.partial(jax.jit, static_argnames=("b_tile",))
def domain_enc_forward(x, domain, prepped, b_tile=4096):
    """x: [B, 74] f32, domain: [B] f32  ->  [B, 100] f32."""
    B = x.shape[0]
    d = domain.reshape(B, 1)

    # Batch tiling without padding: grid = cdiv(B, bt); Pallas pads OOB reads of the
    # ragged last block (rows are independent) and drops its OOB stores. Prefer an
    # even step count when >1 so v7x's two TensorCores get equal shares of the
    # "parallel" axis; round the tile to a sublane multiple of 8.
    n_steps = _cdiv(B, b_tile)
    if n_steps > 1:
        n_steps = _round_up(n_steps, 2)
    bt = _round_up(_cdiv(B, n_steps), 8)
    grid = _cdiv(B, bt)

    def batched(feat):
        return pl.BlockSpec((bt, feat), lambda i: (i, 0))

    def resident(shape):
        # Same block every grid step -> params (~52 KB) stay VMEM-resident.
        return pl.BlockSpec(shape, lambda i: (0, 0))

    in_specs = [
        batched(IN_DIM),                                        # x
        batched(1),                                             # domain
        resident((IN_DIM, H1_DIM)), resident((1, H1_DIM)),      # fc1
        resident((1, HD_DIM)), resident((1, HD_DIM)),           # fc1_var
        resident((H1_DIM, H2_DIM)), resident((HD_DIM, H2_DIM)),
        resident((1, H2_DIM)),                                  # fc2 (split)
        resident((H2_DIM, OUT_DIM)), resident((1, OUT_DIM)),    # fc_final
    ]
    out_spec = pl.BlockSpec((bt, OUT_DIM), lambda i: (i, 0))

    return pl.pallas_call(
        domain_enc_kernel,
        out_shape=jax.ShapeDtypeStruct((B, OUT_DIM), jnp.float32),
        grid=(grid,),
        in_specs=in_specs,
        out_specs=out_spec,
        compiler_params=pltpu.CompilerParams(
            dimension_semantics=("parallel",),
            # Covers double-buffered x/out tiles + intermediates at bt<=4096 on all
            # generations (v5e's default scoped limit is only 16 MiB). Raise this if
            # b_tile is pushed past ~8192.
            vmem_limit_bytes=32 * 1024 * 1024),
    )(x, d,
      prepped["w1"], prepped["b1"],
      prepped["w1v"], prepped["b1v"],
      prepped["w2x"], prepped["w2d"], prepped["b2"],
      prepped["wf"], prepped["bf"])


def init_params(key):
    """Deterministic parameter init matching nn.Linear shapes (uniform(-1/sqrt(fan_in),...))."""
    def linear(key, fan_in, fan_out):
        kw, kb = jax.random.split(key)
        bound = 1.0 / jnp.sqrt(fan_in)
        w = jax.random.uniform(kw, (fan_out, fan_in), jnp.float32, -bound, bound)
        b = jax.random.uniform(kb, (fan_out,), jnp.float32, -bound, bound)
        return w, b

    k1, k2, k3, k4 = jax.random.split(key, 4)
    w1, b1 = linear(k1, IN_DIM, H1_DIM)     # fc1
    w2, b2 = linear(k2, H2_DIM, H2_DIM)     # fc2
    wf, bf = linear(k3, H2_DIM, OUT_DIM)    # fc_final
    w1v, b1v = linear(k4, 1, HD_DIM)        # fc1_var
    return dict(w1=w1, b1=b1, w2=w2, b2=b2, wf=wf, bf=bf, w1v=w1v, b1v=b1v)


def reference_forward(x, domain, p):
    d = domain.reshape(-1, 1)
    hd = jax.nn.relu(d @ p["w1v"].T + p["b1v"])
    h1 = jax.nn.relu(x @ p["w1"].T + p["b1"])
    h = jnp.concatenate([h1, hd], axis=1)
    h = jax.nn.relu(h @ p["w2"].T + p["b2"])
    return jax.nn.relu(h @ p["wf"].T + p["bf"])


if __name__ == "__main__":
    key = jax.random.PRNGKey(0)
    kx, kd, kp = jax.random.split(key, 3)

    params = init_params(kp)
    prepped_f32 = prepare_params(params)

    # Small batch (single grid step, tile = 8 rows).
    B = 8
    x = jax.random.normal(kx, (B, IN_DIM), jnp.float32)
    domain = jax.random.uniform(kd, (B,), jnp.float32)

    out = jax.block_until_ready(domain_enc_forward(x, domain, prepped_f32))
    ref = reference_forward(x, domain, params)
    assert out.shape == (B, OUT_DIM)
    assert jnp.allclose(out, ref, atol=1e-5, rtol=1e-5)

    # Non-tile-aligned batch with a multi-step grid and a ragged last block
    # (exercises Pallas' OOB-read padding / masked tail store; no jnp.pad used).
    B2 = 3000
    x2 = jax.random.normal(kx, (B2, IN_DIM), jnp.float32)
    d2 = jax.random.uniform(kd, (B2,), jnp.float32)
    out2 = jax.block_until_ready(domain_enc_forward(x2, d2, prepped_f32, b_tile=1024))
    ref2 = reference_forward(x2, d2, params)
    assert out2.shape == (B2, OUT_DIM)
    assert jnp.allclose(out2, ref2, atol=1e-5, rtol=1e-5)

    # Optional reduced-precision path: bf16 matmul operands, f32 accumulation/IO.
    prepped_bf16 = prepare_params(params, matmul_dtype=jnp.bfloat16)
    out3 = jax.block_until_ready(domain_enc_forward(x2, d2, prepped_bf16, b_tile=1024))
    assert out3.shape == (B2, OUT_DIM)
    assert jnp.allclose(out3, ref2, atol=1e-1, rtol=1e-1)

    print("KERNEL_OK")
</pallas_src>

<mosaic_0001>
module attributes {stable_mosaic.version = 11 : i64} {
  func.func @domain_enc_kernel(%arg0: i32, %arg1: memref<8x74xf32, #tpu.memory_space<vmem>>, %arg2: memref<8x1xf32, #tpu.memory_space<vmem>>, %arg3: memref<74x50xf32, #tpu.memory_space<vmem>>, %arg4: memref<1x50xf32, #tpu.memory_space<vmem>>, %arg5: memref<1x10xf32, #tpu.memory_space<vmem>>, %arg6: memref<1x10xf32, #tpu.memory_space<vmem>>, %arg7: memref<50x60xf32, #tpu.memory_space<vmem>>, %arg8: memref<10x60xf32, #tpu.memory_space<vmem>>, %arg9: memref<1x60xf32, #tpu.memory_space<vmem>>, %arg10: memref<60x100xf32, #tpu.memory_space<vmem>>, %arg11: memref<1x100xf32, #tpu.memory_space<vmem>>, %arg12: memref<8x100xf32, #tpu.memory_space<vmem>>) attributes {dimension_semantics = [#tpu.dimension_semantics<parallel>], iteration_bounds = array<i64: 1>, scalar_prefetch = 0 : i64, scratch_operands = 0 : i64, tpu.core_type = #tpu.core_type<tc>, window_params = [{transform_indices = @transform_0, window_bounds = array<i64: 8, 74>}, {transform_indices = @transform_1, window_bounds = array<i64: 8, 1>}, {pipeline_mode = #tpu.pipeline_mode<synchronous>, transform_indices = @transform_2, window_bounds = array<i64: 74, 50>}, {pipeline_mode = #tpu.pipeline_mode<synchronous>, transform_indices = @transform_3, window_bounds = array<i64: 1, 50>}, {pipeline_mode = #tpu.pipeline_mode<synchronous>, transform_indices = @transform_4, window_bounds = array<i64: 1, 10>}, {pipeline_mode = #tpu.pipeline_mode<synchronous>, transform_indices = @transform_5, window_bounds = array<i64: 1, 10>}, {pipeline_mode = #tpu.pipeline_mode<synchronous>, transform_indices = @transform_6, window_bounds = array<i64: 50, 60>}, {pipeline_mode = #tpu.pipeline_mode<synchronous>, transform_indices = @transform_7, window_bounds = array<i64: 10, 60>}, {pipeline_mode = #tpu.pipeline_mode<synchronous>, transform_indices = @transform_8, window_bounds = array<i64: 1, 60>}, {pipeline_mode = #tpu.pipeline_mode<synchronous>, transform_indices = @transform_9, window_bounds = array<i64: 60, 100>}, {pipeline_mode = #tpu.pipeline_mode<synchronous>, transform_indices = @transform_10, window_bounds = array<i64: 1, 100>}, {transform_indices = @transform_11, window_bounds = array<i64: 8, 100>}]} {
    %c0 = arith.constant 0 : index
    %c0_0 = arith.constant 0 : index
    %0 = vector.load %arg1[%c0, %c0_0] : memref<8x74xf32, #tpu.memory_space<vmem>>, vector<8x74xf32>
    %c0_1 = arith.constant 0 : index
    %c0_2 = arith.constant 0 : index
    %1 = vector.load %arg2[%c0_1, %c0_2] : memref<8x1xf32, #tpu.memory_space<vmem>>, vector<8x1xf32>
    %c0_3 = arith.constant 0 : index
    %c0_4 = arith.constant 0 : index
    %2 = vector.load %arg5[%c0_3, %c0_4] : memref<1x10xf32, #tpu.memory_space<vmem>>, vector<1x10xf32>
    %3 = vector.broadcast %1 : vector<8x1xf32> to vector<8x10xf32>
    %4 = vector.broadcast %2 : vector<1x10xf32> to vector<8x10xf32>
    %5 = arith.mulf %3, %4 : vector<8x10xf32>
    %c0_5 = arith.constant 0 : index
    %c0_6 = arith.constant 0 : index
    %6 = vector.load %arg6[%c0_5, %c0_6] : memref<1x10xf32, #tpu.memory_space<vmem>>, vector<1x10xf32>
    %7 = vector.broadcast %6 : vector<1x10xf32> to vector<8x10xf32>
    %8 = arith.addf %5, %7 : vector<8x10xf32>
    %cst = arith.constant 0.000000e+00 : f32
    %9 = vector.broadcast %cst : f32 to vector<8x10xf32>
    %10 = arith.maximumf %8, %9 : vector<8x10xf32>
    %c0_7 = arith.constant 0 : index
    %c0_8 = arith.constant 0 : index
    %11 = vector.load %arg3[%c0_7, %c0_8] : memref<74x50xf32, #tpu.memory_space<vmem>>, vector<74x50xf32>
    %cst_9 = arith.constant dense<0.000000e+00> : vector<8x50xf32>
    %12 = tpu.matmul %0, %11, %cst_9 {dimension_numbers = #tpu.dot_dimension_numbers<[1], [0], [0], [1], [0, 0, 1, 1], [], []>} : vector<8x74xf32>, vector<74x50xf32>, vector<8x50xf32> -> vector<8x50xf32>
    %c0_10 = arith.constant 0 : index
    %c0_11 = arith.constant 0 : index
    %13 = vector.load %arg4[%c0_10, %c0_11] : memref<1x50xf32, #tpu.memory_space<vmem>>, vector<1x50xf32>
    %14 = vector.broadcast %13 : vector<1x50xf32> to vector<8x50xf32>
    %15 = arith.addf %12, %14 : vector<8x50xf32>
    %cst_12 = arith.constant 0.000000e+00 : f32
    %16 = vector.broadcast %cst_12 : f32 to vector<8x50xf32>
    %17 = arith.maximumf %15, %16 : vector<8x50xf32>
    %c0_13 = arith.constant 0 : index
    %c0_14 = arith.constant 0 : index
    %18 = vector.load %arg7[%c0_13, %c0_14] : memref<50x60xf32, #tpu.memory_space<vmem>>, vector<50x60xf32>
    %cst_15 = arith.constant dense<0.000000e+00> : vector<8x60xf32>
    %19 = tpu.matmul %17, %18, %cst_15 {dimension_numbers = #tpu.dot_dimension_numbers<[1], [0], [0], [1], [0, 0, 1, 1], [], []>} : vector<8x50xf32>, vector<50x60xf32>, vector<8x60xf32> -> vector<8x60xf32>
    %c0_16 = arith.constant 0 : index
    %c0_17 = arith.constant 0 : index
    %20 = vector.load %arg8[%c0_16, %c0_17] : memref<10x60xf32, #tpu.memory_space<vmem>>, vector<10x60xf32>
    %cst_18 = arith.constant dense<0.000000e+00> : vector<8x60xf32>
    %21 = tpu.matmul %10, %20, %cst_18 {dimension_numbers = #tpu.dot_dimension_numbers<[1], [0], [0], [1], [0, 0, 1, 1], [], []>} : vector<8x10xf32>, vector<10x60xf32>, vector<8x60xf32> -> vector<8x60xf32>
    %22 = arith.addf %19, %21 : vector<8x60xf32>
    %c0_19 = arith.constant 0 : index
    %c0_20 = arith.constant 0 : index
    %23 = vector.load %arg9[%c0_19, %c0_20] : memref<1x60xf32, #tpu.memory_space<vmem>>, vector<1x60xf32>
    %24 = vector.broadcast %23 : vector<1x60xf32> to vector<8x60xf32>
    %25 = arith.addf %22, %24 : vector<8x60xf32>
    %cst_21 = arith.constant 0.000000e+00 : f32
    %26 = vector.broadcast %cst_21 : f32 to vector<8x60xf32>
    %27 = arith.maximumf %25, %26 : vector<8x60xf32>
    %c0_22 = arith.constant 0 : index
    %c0_23 = arith.constant 0 : index
    %28 = vector.load %arg10[%c0_22, %c0_23] : memref<60x100xf32, #tpu.memory_space<vmem>>, vector<60x100xf32>
    %cst_24 = arith.constant dense<0.000000e+00> : vector<8x100xf32>
    %29 = tpu.matmul %27, %28, %cst_24 {dimension_numbers = #tpu.dot_dimension_numbers<[1], [0], [0], [1], [0, 0, 1, 1], [], []>} : vector<8x60xf32>, vector<60x100xf32>, vector<8x100xf32> -> vector<8x100xf32>
    %c0_25 = arith.constant 0 : index
    %c0_26 = arith.constant 0 : index
    %30 = vector.load %arg11[%c0_25, %c0_26] : memref<1x100xf32, #tpu.memory_space<vmem>>, vector<1x100xf32>
    %31 = vector.broadcast %30 : vector<1x100xf32> to vector<8x100xf32>
    %32 = arith.addf %29, %31 : vector<8x100xf32>
    %cst_27 = arith.constant 0.000000e+00 : f32
    %33 = vector.broadcast %cst_27 : f32 to vector<8x100xf32>
    %34 = arith.maximumf %32, %33 : vector<8x100xf32>
    %c0_28 = arith.constant 0 : index
    %c0_29 = arith.constant 0 : index
    %35 = vector.load %arg12[%c0_28, %c0_29] : memref<8x100xf32, #tpu.memory_space<vmem>>, vector<8x100xf32>
    tpu.vector_store %arg12[%c0_28, %c0_29], %34 {strides = array<i32>} : memref<8x100xf32, #tpu.memory_space<vmem>>, vector<8x100xf32>,
    return
  }
  func.func @transform_0(%arg0: i32) -> (i32, i32) {
    %c0_i32 = arith.constant 0 : i32
    %c0_i32_0 = arith.constant 0 : i32
    return %arg0, %c0_i32 : i32, i32
  }
  func.func @transform_1(%arg0: i32) -> (i32, i32) {
    %c0_i32 = arith.constant 0 : i32
    %c0_i32_0 = arith.constant 0 : i32
    return %arg0, %c0_i32 : i32, i32
  }
  func.func @transform_2(%arg0: i32) -> (i32, i32) {
    %c0_i32 = arith.constant 0 : i32
    %c0_i32_0 = arith.constant 0 : i32
    %c0_i32_1 = arith.constant 0 : i32
    return %c0_i32, %c0_i32_0 : i32, i32
  }
  func.func @transform_3(%arg0: i32) -> (i32, i32) {
    %c0_i32 = arith.constant 0 : i32
    %c0_i32_0 = arith.constant 0 : i32
    %c0_i32_1 = arith.constant 0 : i32
    return %c0_i32, %c0_i32_0 : i32, i32
  }
  func.func @transform_4(%arg0: i32) -> (i32, i32) {
    %c0_i32 = arith.constant 0 : i32
    %c0_i32_0 = arith.constant 0 : i32
    %c0_i32_1 = arith.constant 0 : i32
    return %c0_i32, %c0_i32_0 : i32, i32
  }
  func.func @transform_5(%arg0: i32) -> (i32, i32) {
    %c0_i32 = arith.constant 0 : i32
    %c0_i32_0 = arith.constant 0 : i32
    %c0_i32_1 = arith.constant 0 : i32
    return %c0_i32, %c0_i32_0 : i32, i32
  }
  func.func @transform_6(%arg0: i32) -> (i32, i32) {
    %c0_i32 = arith.constant 0 : i32
    %c0_i32_0 = arith.constant 0 : i32
    %c0_i32_1 = arith.constant 0 : i32
    return %c0_i32, %c0_i32_0 : i32, i32
  }
  func.func @transform_7(%arg0: i32) -> (i32, i32) {
    %c0_i32 = arith.constant 0 : i32
    %c0_i32_0 = arith.constant 0 : i32
    %c0_i32_1 = arith.constant 0 : i32
    return %c0_i32, %c0_i32_0 : i32, i32
  }
  func.func @transform_8(%arg0: i32) -> (i32, i32) {
    %c0_i32 = arith.constant 0 : i32
    %c0_i32_0 = arith.constant 0 : i32
    %c0_i32_1 = arith.constant 0 : i32
    return %c0_i32, %c0_i32_0 : i32, i32
  }
  func.func @transform_9(%arg0: i32) -> (i32, i32) {
    %c0_i32 = arith.constant 0 : i32
    %c0_i32_0 = arith.constant 0 : i32
    %c0_i32_1 = arith.constant 0 : i32
    return %c0_i32, %c0_i32_0 : i32, i32
  }
  func.func @transform_10(%arg0: i32) -> (i32, i32) {
    %c0_i32 = arith.constant 0 : i32
    %c0_i32_0 = arith.constant 0 : i32
    %c0_i32_1 = arith.constant 0 : i32
    return %c0_i32, %c0_i32_0 : i32, i32
  }
  func.func @transform_11(%arg0: i32) -> (i32, i32) {
    %c0_i32 = arith.constant 0 : i32
    %c0_i32_0 = arith.constant 0 : i32
    return %arg0, %c0_i32 : i32, i32
  }
}

</mosaic_0001>

<bundles_post_ra>
// kernel: domain_enc_forward.1
= control target key start
LH: loop header
LB: loop body
LE: loop exit
PB: predicated region body
PF: predicated region fallthrough
CT: control target
= control target key end

     0   :  { %vm84_vm0 = vcmask 1041408   ;;  %v578_v1 = vmov 0.0   ;;  %vm579_vm1 = vmmov 0   ;;  %v580_v4 = vmov 0   ;;  %s785_s0 = inlined_call_operand.vmem [shape: f32[8,74], index: 0, kind: input, shape index: {}]   ;;  %s786_s1 = inlined_call_operand.vmem [shape: f32[8,1], index: 1, kind: input, shape index: {}]   ;;  %s787_s2 = inlined_call_operand.vmem [shape: f32[74,50], index: 2, kind: input, shape index: {}]   ;;  %s788_s3 = inlined_call_operand.vmem [shape: f32[1,50], index: 3, kind: input, shape index: {}]   ;;  %s789_s4 = inlined_call_operand.vmem [shape: f32[1,10], index: 4, kind: input, shape index: {}]   ;;  %s790_s5 = inlined_call_operand.vmem [shape: f32[1,10], index: 5, kind: input, shape index: {}]   ;;  %s791_s6 = inlined_call_operand.vmem [shape: f32[50,60], index: 6, kind: input, shape index: {}]   ;;  %s792_s7 = inlined_call_operand.vmem [shape: f32[10,60], index: 7, kind: input, shape index: {}]   ;;  %s793_s8 = inlined_call_operand.vmem [shape: f32[1,60], index: 8, kind: input, shape index: {}]   ;;  %s794_s9 = inlined_call_operand.vmem [shape: f32[60,100], index: 9, kind: input, shape index: {}]   ;;  %s795_s10 = inlined_call_operand.vmem [shape: f32[1,100], index: 10, kind: input, shape index: {}]   ;;  %s796_s11 = inlined_call_operand.hbm [shape: f32[8,100], index: 11, kind: output, shape index: {}]  }
   0x1   :  { %v72_v0 = vld [vmem:[%s787_s2 + $0x48] sm:$0x3]  ;;  %485 = vmatprep.subr.mxu0 %v578_v1  ;;  %v71_v2 = vld [vmem:[%s787_s2 + $0x40] sm:$0xff]  ;;  %515 = vmatprep.subr.mxu1 %v578_v1  ;;  %v70_v3 = vld [vmem:[%s787_s2 + $0x38] sm:$0xff] }
   0x2   :  { %486 = vmatpush3.msk.msra.mxu0 %vm84_vm0, %v72_v0  ;;  %505 = vmatprep.mubr.msk.f32.mxu0 %vm579_vm1, %v578_v1  ;;  %v40_v5 = vld [vmem:[%s786_s1] sm:$0xff]  ;;  %v165_v6 = vld [vmem:[%s791_s6 + $0x30] sm:$0x3]  ;;  %v164_v7 = vld [vmem:[%s791_s6 + $0x28] sm:$0xff] }
   0x3   :  { %487 = vmatprep.subr.mxu0 %v578_v1  ;;  %555 = vset.pattern.permute.xlu0 %v580_v4  ;;  %v69_v8 = vld [vmem:[%s787_s2 + $0x30] sm:$0xff]  ;;  %v163_v9 = vld [vmem:[%s791_s6 + $0x20] sm:$0xff] }
   0x4   :  { %488 = vmatpush3.msra.mxu0 %v71_v2  ;;  %44 = vperm.xlu0 %555, %v40_v5  }
   0x5   :  { %489 = vmatprep.subr.mxu0 %v578_v1  ;;  %516 = vmatpush3.msk.msra.mxu1 %vm84_vm0, %v165_v6 }
   0x6   :  { %490 = vmatpush3.msra.mxu0 %v70_v3  ;;  %517 = vmatprep.subr.mxu1 %v578_v1 }
   0x7   :  { %16 = vsyncpa [#allocation3], 0  ;;  %491 = vmatprep.subr.mxu0 %v578_v1  ;;  %v68_v10 = vld [vmem:[%s787_s2 + $0x28] sm:$0xff]  ;;  %518 = vmatpush3.msra.mxu1 %v164_v7  ;;  %v162_v11 = vld [vmem:[%s791_s6 + $0x18] sm:$0xff]  ;;  %vm80_vm2 = vcmask 605184   ;;  %vm168_vm3 = vcmask 80896  }
   0x8   :  { %492 = vmatpush3.msra.mxu0 %v69_v8  ;;  %519 = vmatprep.subr.mxu1 %v578_v1  ;;  %v67_v12 = vld [vmem:[%s787_s2 + $0x20] sm:$0xff]  ;;  %v66_v13 = vld [vmem:[%s787_s2 + $0x18] sm:$0xff]  ;;  %v65_v14 = vld [vmem:[%s787_s2 + $0x10] sm:$0xff]  ;;  %vm245_vm4 = vcmask 408576   ;;  %vm350_vm5 = vcmask 1043456   ;;  %vm346_vm6 = vcmask 490496  }
   0x9   :  { %493 = vmatprep.subr.mxu0 %v578_v1  ;;  %520 = vmatpush3.msra.mxu1 %v163_v9  ;;  %v64_v15 = vld [vmem:[%s787_s2 + $0x8] sm:$0xff]  ;;  %v63_v16 = vld [vmem:[%s787_s2] sm:$0xff]  ;;  %v161_v19 = vld [vmem:[%s791_s6 + $0x10] sm:$0xff]  ;;  %vm425_vm7 = vcmask 818176  }
   0xa   :  { %494 = vmatpush3.msra.mxu0 %v68_v10  ;;  %521 = vmatprep.subr.mxu1 %v578_v1  ;;  %v39_v17 = vld [vmem:[%s785_s0] sm:$0xff]  ;;  %v167_v18 = vld [vmem:[%s792_s7 + $0x8] sm:$0x3]  ;;  %v338_v34 = vld [vmem:[%s794_s9 + $0x38] sm:$0xf] }
   0xb   :  { %495 = vmatprep.subr.mxu0 %v578_v1  ;;  %522 = vmatpush3.msra.mxu1 %v162_v11  ;;  %v166_v20 = vld [vmem:[%s792_s7] sm:$0xff]  ;;  %v160_v21 = vld [vmem:[%s791_s6 + $0x8] sm:$0xff]  ;;  %v337_v35 = vld [vmem:[%s794_s9 + $0x30] sm:$0xff] }
   0xc   :  { %496 = vmatpush3.msra.mxu0 %v67_v12  ;;  %523 = vmatprep.subr.mxu1 %v578_v1  ;;  %v159_v22 = vld [vmem:[%s791_s6] sm:$0xff]  ;;  %v336_v36 = vld [vmem:[%s794_s9 + $0x28] sm:$0xff]  ;;  %v334_v38 = vld [vmem:[%s794_s9 + $0x18] sm:$0xff] }
   0xd   :  { %497 = vmatprep.subr.mxu0 %v578_v1  ;;  %529 = vmatprep.mubr.msk.f32.mxu1 %vm579_vm1, %v578_v1  ;;  %v441_v23 = vld [vmem:[%s789_s4] ss:$0 sm:$0xff]  ;;  %v333_v39 = vld [vmem:[%s794_s9 + $0x10] sm:$0xff]  ;;  %v332_v40 = vld [vmem:[%s794_s9 + $0x8] sm:$0xff] }
   0xe   :  { %498 = vmatpush3.msra.mxu0 %v66_v13  ;;  %524 = vmatpush3.msra.mxu1 %v161_v19  ;;  %v442_v24 = vld [vmem:[%s790_s5] ss:$0 sm:$0xff] }
   0xf   :  { %499 = vmatprep.subr.mxu0 %v578_v1  ;;  %525 = vmatprep.subr.mxu1 %v578_v1  ;;  %v443_v29 = vld [vmem:[%s788_s3] ss:$0 sm:$0xff] }
  0x10   :  { %500 = vmatpush3.msra.mxu0 %v65_v14  ;;  %526 = vmatpush3.msra.mxu1 %v160_v21  ;;  %v335_v37 = vld [vmem:[%s794_s9 + $0x20] sm:$0xff] }
  0x11   :  { %501 = vmatprep.subr.mxu0 %v578_v1  ;;  %527 = vmatprep.subr.mxu1 %v578_v1  ;;  %v331_v41 = vld [vmem:[%s794_s9] sm:$0xff]  ;;  %s581_s9 = smov [#allocation2]  }
  0x12   :  { %502 = vmatpush3.msra.mxu0 %v64_v15  ;;  %528 = vmatpush3.msra.mxu1 %v159_v22  ;;  %v450_v45 = vld [vmem:[%s793_s8] ss:$0 sm:$0xff]  ;;  %s433_s16 = sshll.u32 %s581_s9, 4  ;;  %s434_s16 = int_to_ptr.vmem [resolvable:$true] %s433_s16 }
  0x13   :  { %503 = vmatprep.subr.mxu0 %v578_v1  ;;  %532 = vmatprep.subr.mxu1 %v578_v1  ;;  %v451_v50 = vld [vmem:[%s795_s10] ss:$0 sm:$0xff]  ;;  %s556_s8 = scalar_lea.vmem %s434_s16, 128  ;;  %p561_p1 = scmp.lt.s32.totalorder %s434_s16, %s434_s16 }
  0x14   :  { %504 = vmatpush3.msra.mxu0 %v63_v16  ;;  %p557_p0 = scmp.ne.s32.totalorder %s434_s16, %s556_s8  ;;  %p562_p2 = scmp.lt.s32.totalorder %s556_s8, %s556_s8 }
  0x15   :  { %506 = vmatmul.mubr.msk.f32.vlgmr.msra.gmra.mxu0 %vm80_vm2, %v39_v17  ;;  %508 = vmatprep.subr.mxu0 %v578_v1 }
  0x16   :  { %512 = vmatprep.mubr.msk.f32.mxu0 %vm579_vm1, %v578_v1  ;;  %509 = vmatpush3.msk.msra.mxu0 %vm84_vm0, %v167_v18  ;;  %p563_p3 = por %p562_p2, %p561_p1 }
  0x17   :  { %510 = vmatprep.subr.mxu0 %v578_v1 }
  0x18   :  { %511 = vmatpush3.msra.mxu0 %v166_v20  ;;  %p564_p4 = pnand %p563_p3, %p557_p0 }
  0x7f   :  { %v45_v25 = vpop.permute.xlu0 %44 }
  0x80   :  { %v53_v26 = vmul.f32 %v441_v23, %v45_v25 }
  0x82   :  { %v61_v27 = vadd.f32 %v442_v24, %v53_v26 }
  0x84   :  { %v62_v28 = vmax.f32 %v61_v27, 0.0 }
  0x86   :  { %513 = vmatmul.mubr.msk.f32.vlgmr.msra.gmra.mxu0 %vm168_vm3, %v62_v28 }
  0xd5   :  { %v154_v30 = vpop.f32.mrf.mxu0 }
  0xd6   :  { %v155_v31 = vadd.f32 %v443_v29, %v154_v30 }
  0xd7   :  { %v507_v32 = vpop.f32.mrf.mxu0 }
  0xd8   :  { %v158_v33 = vmax.f32 %v155_v31, 0.0 }
  0xda   :  { %530 = vmatmul.mubr.msk.f32.vlgmr.msra.gmra.mxu1 %vm245_vm4, %v158_v33 }
  0xdb   :  { %533 = vmatpush3.msk.msra.mxu1 %vm350_vm5, %v338_v34  ;;  %548 = vmatprep.mubr.msk.f32.mxu1 %vm579_vm1, %v578_v1 }
  0xdc   :  { %534 = vmatprep.subr.mxu1 %v578_v1 }
  0xdd   :  { %535 = vmatpush3.msra.mxu1 %v337_v35 }
  0xde   :  { %536 = vmatprep.subr.mxu1 %v578_v1 }
  0xdf   :  { %537 = vmatpush3.msra.mxu1 %v336_v36 }
  0xe0   :  { %538 = vmatprep.subr.mxu1 %v578_v1 }
  0xe1   :  { %539 = vmatpush3.msra.mxu1 %v335_v37 }
  0xe2   :  { %540 = vmatprep.subr.mxu1 %v578_v1 }
  0xe3   :  { %541 = vmatpush3.msra.mxu1 %v334_v38 }
  0xe4   :  { %542 = vmatprep.subr.mxu1 %v578_v1 }
  0xe5   :  { %543 = vmatpush3.msra.mxu1 %v333_v39 }
  0xe6   :  { %544 = vmatprep.subr.mxu1 %v578_v1 }
  0xe7   :  { %545 = vmatpush3.msra.mxu1 %v332_v40 }
  0xe8   :  { %546 = vmatprep.subr.mxu1 %v578_v1 }
  0xe9   :  { %547 = vmatpush3.msra.mxu1 %v331_v41 }
 0x146   :  { %v241_v42 = vpop.f32.mrf.mxu0 }
 0x148   :  { %v514_v43 = vpop.f32.mrf.mxu0 }
 0x19a   :  { %v318_v44 = vpop.f32.mrf.mxu1 }
 0x19b   :  { %v319_v46 = vadd.f32 %v318_v44, %v241_v42 }
 0x19c   :  { %v531_v47 = vpop.f32.mrf.mxu1 }
 0x19d   :  { %v329_v48 = vadd.f32 %v450_v45, %v319_v46 }
 0x19f   :  { %v330_v49 = vmax.f32 %v329_v48, 0.0 }
 0x1a1   :  { %549 = vmatmul.mubr.msk.f32.vlgmr.msra.gmra.mxu1 %vm346_vm6, %v330_v49 }
 0x261   :  { %v420_v51 = vpop.f32.mrf.mxu1 }
 0x262   :  { %v421_v52 = vadd.f32 %v451_v50, %v420_v51 }
 0x263   :  { %v550_v53 = vpop.f32.mrf.mxu1 }
 0x264   :  { %v424_v54 = vmax.f32 %v421_v52, 0.0 }
 0x266   :  { %426 = vst.msk [vmem:[#allocation2] sm:$0xff] %vm425_vm7, %v424_v54 }
 0x267   :  { %567 = shalt.err (!%p564_p4)
}
 0x268   :  { %436 = dma.vmem_to_hbm [thread:$0]  %s434_s16, 128, %s796_s11, [#allocation3]  }
 0x269   :  { %576 = dma.done.wait [#allocation3], 128  }
 0x26a   :  { %577 = vsyncadd [#allocation3], 4294967168 }
 0x26b   :  { %440 = vsyncpa [#allocation3], 1 }

</bundles_post_ra>
